<compile_context>
chip_gen: v7x
topology: tpu7x:2x2x1
jax: 0.10.0
libtpu: 0.0.40
codegen_flags: <defaults>
</compile_context>

<pallas_src>
import functools

import jax
import jax.numpy as jnp
import numpy as np
from jax.experimental import pallas as pl
from jax.experimental.pallas import tpu as pltpu

EPS = 1e-5
LANE = 128
_TILE_VMEM_BUDGET = 12 << 20   # target bytes of batch-tile-scaled VMEM per kernel
_MAX_TILE_ROWS = 4096


def _round_up(x, m):
    return (x + m - 1) // m * m


def _cdiv(a, b):
    return -(-a // b)


def _pad2(a, rows, cols, dtype):
    return jnp.pad(a, ((0, rows - a.shape[0]), (0, cols - a.shape[1]))).astype(dtype)


@functools.lru_cache(maxsize=1)
def _vmem_capacity_bytes():
    try:
        cap = int(getattr(pltpu.get_tpu_info(), "vmem_capacity_bytes", 0))
        if cap > 0:
            return cap
    except Exception:
        pass
    return 64 << 20   # conservative fallback: v7x per-TensorCore physical VMEM


def _mosaic_params(tile_io_bytes, resident_bytes, temp_bytes):
    # Double-buffered batch-tiled blocks + resident weights/affines + in-kernel f32
    # temporaries + slack; clamp to ~85% of this generation's physical VMEM so v5e/v6e
    # can exceed 64 MiB while v7x keeps headroom for Mosaic scratch and semaphores.
    est = 2 * tile_io_bytes + resident_bytes + temp_bytes + (2 << 20)
    hi = int(_vmem_capacity_bytes() * 0.85)
    return pltpu.CompilerParams(
        dimension_semantics=("parallel",),
        vmem_limit_bytes=int(min(max(est, 8 << 20), hi)),
    )


# ----------------------------- kernels ---------------------------------------

def _stats_rows(h):
    """Compact per-feature sum / sum-of-squares block: shape (1, 2, hid)."""
    s = jnp.sum(h, axis=0, keepdims=True)
    q = jnp.sum(h * h, axis=0, keepdims=True)
    return jnp.concatenate([s, q], axis=0)[None]


def _linear_stats_only_kernel(x_ref, w_ref, stats_ref):
    # Layer-1 statistics only (no h1 writeback -- recompute path).
    h = jnp.dot(x_ref[...], w_ref[...], preferred_element_type=jnp.float32)
    stats_ref[...] = _stats_rows(h)


def _linear_bn_relu_linear_stats_kernel(x_ref, w1_ref, scale_ref, shift_ref, w2_ref,
                                         o_ref, stats_ref,
                                         *, n_valid, tile_n, need_mask):
    # Recompute x@W1 (skips the h1 HBM round-trip), fold BN1 as one FMA, ReLU,
    # then @W2 with fused layer-2 statistics.
    h1 = jnp.dot(x_ref[...], w1_ref[...], preferred_element_type=jnp.float32)
    a = jnp.maximum(h1 * scale_ref[...] + shift_ref[...], 0.0)
    if need_mask:
        # Zero padded batch rows so they cannot pollute the next layer's BN stats.
        row = (pl.program_id(0) * tile_n
               + jax.lax.broadcasted_iota(jnp.int32, a.shape, 0))
        a = jnp.where(row < n_valid, a, 0.0)
    h2 = jnp.dot(a.astype(w2_ref.dtype), w2_ref[...],
                 preferred_element_type=jnp.float32)
    o_ref[...] = h2.astype(o_ref.dtype)
    stats_ref[...] = _stats_rows(h2)


def _linear_stats_kernel(x_ref, w_ref, h_ref, stats_ref):
    # Stored-h1 path: h1 = x@W1 written back + fused layer-1 statistics.
    h = jnp.dot(x_ref[...], w_ref[...], preferred_element_type=jnp.float32)
    h_ref[...] = h.astype(h_ref.dtype)
    stats_ref[...] = _stats_rows(h)


def _bn_relu_linear_stats_kernel(h_ref, scale_ref, shift_ref, w_ref,
                                 o_ref, stats_ref, *, n_valid, tile_n, need_mask):
    # a = relu(h * scale + shift) -- folded BatchNorm affine, then @W2 + stats.
    a = jnp.maximum(
        h_ref[...].astype(jnp.float32) * scale_ref[...] + shift_ref[...], 0.0)
    if need_mask:
        row = (pl.program_id(0) * tile_n
               + jax.lax.broadcasted_iota(jnp.int32, a.shape, 0))
        a = jnp.where(row < n_valid, a, 0.0)
    h2 = jnp.dot(a.astype(w_ref.dtype), w_ref[...],
                 preferred_element_type=jnp.float32)
    o_ref[...] = h2.astype(o_ref.dtype)
    stats_ref[...] = _stats_rows(h2)


def _bn_relu_linear_bias_kernel(h_ref, scale_ref, shift_ref, w_ref, bias_ref, o_ref):
    a = jnp.maximum(
        h_ref[...].astype(jnp.float32) * scale_ref[...] + shift_ref[...], 0.0)
    out = jnp.dot(a.astype(w_ref.dtype), w_ref[...],
                  preferred_element_type=jnp.float32)
    o_ref[...] = (out + bias_ref[...]).astype(o_ref.dtype)


# --------------------------- pallas_call wrappers -----------------------------

def _linear_stats_only(xp, wp, tile):
    n_p, in_p = xp.shape
    hid_p = wp.shape[1]
    nt = n_p // tile
    xb = np.dtype(xp.dtype).itemsize
    wb = np.dtype(wp.dtype).itemsize
    tiled = tile * in_p * xb + 2 * hid_p * 4
    resident = in_p * hid_p * wb
    temps = 3 * tile * hid_p * 4
    return pl.pallas_call(
        _linear_stats_only_kernel,
        out_shape=jax.ShapeDtypeStruct((nt, 2, hid_p), jnp.float32),
        grid=(nt,),
        in_specs=[
            pl.BlockSpec((tile, in_p), lambda i: (i, 0)),
            pl.BlockSpec((in_p, hid_p), lambda i: (0, 0)),
        ],
        out_specs=pl.BlockSpec((1, 2, hid_p), lambda i: (i, 0, 0)),
        compiler_params=_mosaic_params(tiled, resident, temps),
    )(xp, wp)


def _linear_bn_relu_linear_stats(xp, w1p, scale1, shift1, w2p, tile, n_valid,
                                 act_dtype):
    n_p, in_p = xp.shape
    hid1 = w1p.shape[1]
    hid2 = w2p.shape[1]
    nt = n_p // tile
    xb = np.dtype(xp.dtype).itemsize
    ab = np.dtype(act_dtype).itemsize
    wb = np.dtype(w1p.dtype).itemsize
    tiled = tile * in_p * xb + tile * hid2 * ab + 2 * hid2 * 4
    resident = (in_p * hid1 + hid1 * hid2) * wb + 2 * hid1 * 4
    temps = 3 * tile * max(hid1, hid2) * 4
    kernel = functools.partial(
        _linear_bn_relu_linear_stats_kernel,
        n_valid=n_valid, tile_n=tile, need_mask=(n_p != n_valid))
    return pl.pallas_call(
        kernel,
        out_shape=(
            jax.ShapeDtypeStruct((n_p, hid2), act_dtype),
            jax.ShapeDtypeStruct((nt, 2, hid2), jnp.float32),
        ),
        grid=(nt,),
        in_specs=[
            pl.BlockSpec((tile, in_p), lambda i: (i, 0)),
            pl.BlockSpec((in_p, hid1), lambda i: (0, 0)),
            pl.BlockSpec((1, hid1), lambda i: (0, 0)),
            pl.BlockSpec((1, hid1), lambda i: (0, 0)),
            pl.BlockSpec((hid1, hid2), lambda i: (0, 0)),
        ],
        out_specs=(
            pl.BlockSpec((tile, hid2), lambda i: (i, 0)),
            pl.BlockSpec((1, 2, hid2), lambda i: (i, 0, 0)),
        ),
        compiler_params=_mosaic_params(tiled, resident, temps),
    )(xp, w1p, scale1, shift1, w2p)


def _linear_stats(xp, wp, tile, act_dtype):
    n_p, in_p = xp.shape
    hid_p = wp.shape[1]
    nt = n_p // tile
    xb = np.dtype(xp.dtype).itemsize
    ab = np.dtype(act_dtype).itemsize
    wb = np.dtype(wp.dtype).itemsize
    tiled = tile * in_p * xb + tile * hid_p * ab + 2 * hid_p * 4
    resident = in_p * hid_p * wb
    temps = 3 * tile * hid_p * 4
    return pl.pallas_call(
        _linear_stats_kernel,
        out_shape=(
            jax.ShapeDtypeStruct((n_p, hid_p), act_dtype),
            jax.ShapeDtypeStruct((nt, 2, hid_p), jnp.float32),
        ),
        grid=(nt,),
        in_specs=[
            pl.BlockSpec((tile, in_p), lambda i: (i, 0)),
            pl.BlockSpec((in_p, hid_p), lambda i: (0, 0)),
        ],
        out_specs=(
            pl.BlockSpec((tile, hid_p), lambda i: (i, 0)),
            pl.BlockSpec((1, 2, hid_p), lambda i: (i, 0, 0)),
        ),
        compiler_params=_mosaic_params(tiled, resident, temps),
    )(xp, wp)


def _bn_relu_linear_stats(h1, scale, shift, wp, tile, n_valid):
    n_p, hid1 = h1.shape
    hid2 = wp.shape[1]
    nt = n_p // tile
    ab = np.dtype(h1.dtype).itemsize
    wb = np.dtype(wp.dtype).itemsize
    tiled = tile * hid1 * ab + tile * hid2 * ab + 2 * hid2 * 4
    resident = hid1 * hid2 * wb + 2 * hid1 * 4
    temps = 3 * tile * max(hid1, hid2) * 4
    kernel = functools.partial(
        _bn_relu_linear_stats_kernel,
        n_valid=n_valid, tile_n=tile, need_mask=(n_p != n_valid))
    return pl.pallas_call(
        kernel,
        out_shape=(
            jax.ShapeDtypeStruct((n_p, hid2), h1.dtype),
            jax.ShapeDtypeStruct((nt, 2, hid2), jnp.float32),
        ),
        grid=(nt,),
        in_specs=[
            pl.BlockSpec((tile, hid1), lambda i: (i, 0)),
            pl.BlockSpec((1, hid1), lambda i: (0, 0)),
            pl.BlockSpec((1, hid1), lambda i: (0, 0)),
            pl.BlockSpec((hid1, hid2), lambda i: (0, 0)),
        ],
        out_specs=(
            pl.BlockSpec((tile, hid2), lambda i: (i, 0)),
            pl.BlockSpec((1, 2, hid2), lambda i: (i, 0, 0)),
        ),
        compiler_params=_mosaic_params(tiled, resident, temps),
    )(h1, scale, shift, wp)


def _bn_relu_linear_bias(h2, scale, shift, wp, biasp, tile, out_dtype):
    n_p, hid2 = h2.shape
    out_p = wp.shape[1]
    nt = n_p // tile
    ab = np.dtype(h2.dtype).itemsize
    wb = np.dtype(wp.dtype).itemsize
    ob = np.dtype(out_dtype).itemsize
    tiled = tile * hid2 * ab + tile * out_p * ob
    resident = hid2 * out_p * wb + 2 * hid2 * 4 + out_p * 4
    temps = 3 * tile * max(hid2, out_p) * 4
    return pl.pallas_call(
        _bn_relu_linear_bias_kernel,
        out_shape=jax.ShapeDtypeStruct((n_p, out_p), out_dtype),
        grid=(nt,),
        in_specs=[
            pl.BlockSpec((tile, hid2), lambda i: (i, 0)),
            pl.BlockSpec((1, hid2), lambda i: (0, 0)),
            pl.BlockSpec((1, hid2), lambda i: (0, 0)),
            pl.BlockSpec((hid2, out_p), lambda i: (0, 0)),
            pl.BlockSpec((1, out_p), lambda i: (0, 0)),
        ],
        out_specs=pl.BlockSpec((tile, out_p), lambda i: (i, 0)),
        compiler_params=_mosaic_params(tiled, resident, temps),
    )(h2, scale, shift, wp, biasp)


# ------------------------------ driver ----------------------------------------

def _bn_scale_shift(stats, n, gamma, beta):
    """Cross-tile reduction of per-tile stats + folded BN affine (tiny, plain JAX)."""
    total = jnp.sum(stats[:, 0, :], axis=0)
    total_sq = jnp.sum(stats[:, 1, :], axis=0)
    mean = total / n
    # TODO(synk): E[x^2]-E[x]^2 in f32 can lose precision when |mean| >> std; switch to
    # a shifted / two-pass reduction if BN accuracy at extreme scales ever matters.
    var = jnp.maximum(total_sq / n - mean * mean, 0.0)   # biased variance, f32
    scale = gamma * jax.lax.rsqrt(var + EPS)
    shift = beta - mean * scale
    return scale.reshape(1, -1), shift.reshape(1, -1)


def mlp_pallas(x, params, *, compute_dtype=None, act_dtype=jnp.bfloat16,
               max_tile_rows=_MAX_TILE_ROWS):
    """x: (..., in_dim). Returns (..., out_dim). Training-mode BatchNorm semantics.

    compute_dtype: dtype of the X tiles / weights fed to the MXU (default: x.dtype).
    act_dtype: storage dtype of the h1/h2 intermediates (default bf16; BN statistics,
    the folded affine and MXU accumulation stay f32).
    """
    w1, g1, b1, w2, g2, b2, w3, bias3 = params
    in_dim, hid_dim = w1.shape
    out_dim = w3.shape[1]
    cdt = np.dtype(compute_dtype) if compute_dtype is not None else np.dtype(x.dtype)
    adt = np.dtype(act_dtype)
    odt = np.dtype(x.dtype)

    # batch_flatten
    lead = x.shape[:-1]
    xf = x.reshape(-1, in_dim)
    n = xf.shape[0]

    # Lane-dense / MXU-aligned feature padding.
    in_p = _round_up(in_dim, LANE)
    hid_p = _round_up(hid_dim, LANE)
    out_p = _round_up(out_dim, LANE)

    xb, ab, ob = cdt.itemsize, adt.itemsize, odt.itemsize

    # Adaptive batch tile: as large as the VMEM budget allows (amortizes the ~0.35us
    # per-grid-step overhead), minimal padding (<= nt*row_align extra rows), and split
    # into >= 2 tiles when possible so both v7x TensorCores get work.
    row_align = 16 if min(xb, ab) < 4 else 8
    per_row = 2 * (in_p * xb + 2 * hid_p * ab + out_p * ob) + 3 * max(hid_p, out_p) * 4
    tile_cap = max(row_align,
                   min(max_tile_rows, _TILE_VMEM_BUDGET // per_row)
                   // row_align * row_align)
    nt = _cdiv(n, tile_cap)
    if nt == 1 and n > 2 * row_align:
        nt = 2   # megacore: give both v7x TensorCores a tile (harmless on v5e/v6e)
    tile = _round_up(_cdiv(n, nt), row_align)
    n_p = nt * tile

    xp = _pad2(xf, n_p, in_p, cdt)
    w1p = _pad2(w1, in_p, hid_p, cdt)
    w2p = _pad2(w2, hid_p, hid_p, cdt)
    w3p = _pad2(w3, hid_p, out_p, cdt)
    # TODO(synk): K-tile W2/W3 instead of holding them resident once their bytes exceed
    # ~1/4 of this generation's VMEM capacity (trips notably earlier on v7x's 64 MiB);
    # unnecessary at the sizes exercised here.
    g1p = jnp.pad(g1.reshape(-1), (0, hid_p - hid_dim)).astype(jnp.float32)
    b1p = jnp.pad(b1.reshape(-1), (0, hid_p - hid_dim)).astype(jnp.float32)
    g2p = jnp.pad(g2.reshape(-1), (0, hid_p - hid_dim)).astype(jnp.float32)
    b2p = jnp.pad(b2.reshape(-1), (0, hid_p - hid_dim)).astype(jnp.float32)
    bias3p = jnp.pad(bias3.reshape(-1),
                     (0, out_p - out_dim)).astype(jnp.float32).reshape(1, out_p)

    # Skip the h1 HBM round-trip (recompute X@W1 in layer 2) whenever re-reading X is
    # cheaper than writing + reading h1.
    recompute_h1 = in_p * xb <= 2 * hid_p * ab

    if recompute_h1:
        stats1 = _linear_stats_only(xp, w1p, tile)
        scale1, shift1 = _bn_scale_shift(stats1, n, g1p, b1p)
        h2, stats2 = _linear_bn_relu_linear_stats(xp, w1p, scale1, shift1, w2p,
                                                  tile, n, adt)
    else:
        h1, stats1 = _linear_stats(xp, w1p, tile, adt)
        scale1, shift1 = _bn_scale_shift(stats1, n, g1p, b1p)
        h2, stats2 = _bn_relu_linear_stats(h1, scale1, shift1, w2p, tile, n)
    scale2, shift2 = _bn_scale_shift(stats2, n, g2p, b2p)

    # Layer 3: BN2 + ReLU + @W3 + bias (lane-dense padded output, sliced outside).
    outp = _bn_relu_linear_bias(h2, scale2, shift2, w3p, bias3p, tile, odt)

    out = outp[:n, :out_dim]
    return out.reshape(*lead, out_dim)   # batch_unflatten


# ------------------------------ reference -------------------------------------

def mlp_reference(x, params):
    """Pure-JAX f32 reference for validation (training-mode BatchNorm)."""
    w1, g1, b1, w2, g2, b2, w3, bias3 = params
    lead = x.shape[:-1]
    h = x.reshape(-1, x.shape[-1]).astype(jnp.float32)

    def bn(h, g, b):
        m = jnp.mean(h, axis=0, keepdims=True)
        v = jnp.mean((h - m) ** 2, axis=0, keepdims=True)
        return (h - m) / jnp.sqrt(v + EPS) * g + b

    h = jnp.maximum(bn(h @ w1, g1, b1), 0.0)
    h = jnp.maximum(bn(h @ w2, g2, b2), 0.0)
    out = h @ w3 + bias3
    return out.reshape(*lead, w3.shape[1]).astype(x.dtype)


def init_params(key, in_dim, hid_dim, out_dim):
    ks = jax.random.split(key, 6)
    # Linear weights stored as (in_features, out_features) == PyTorch weight.T
    w1 = jax.random.normal(ks[0], (in_dim, hid_dim), jnp.float32) / np.sqrt(in_dim)
    w2 = jax.random.normal(ks[1], (hid_dim, hid_dim), jnp.float32) / np.sqrt(hid_dim)
    w3 = jax.random.normal(ks[2], (hid_dim, out_dim), jnp.float32) / np.sqrt(hid_dim)
    bias3 = jax.random.normal(ks[3], (out_dim,), jnp.float32) * 0.01
    g1 = 1.0 + 0.1 * jax.random.normal(ks[4], (hid_dim,), jnp.float32)
    b1 = jnp.zeros((hid_dim,), jnp.float32)
    g2 = 1.0 + 0.1 * jax.random.normal(ks[5], (hid_dim,), jnp.float32)
    b2 = jnp.zeros((hid_dim,), jnp.float32)
    return (w1, g1, b1, w2, g2, b2, w3, bias3)


if __name__ == "__main__":
    key = jax.random.PRNGKey(0)
    kx, kp, kp2 = jax.random.split(key, 3)

    # --- small configuration: exercises the recompute-h1 (no h1 round-trip) path ---
    in_dim, hid_dim, out_dim = 16, 32, 8
    params = init_params(kp, in_dim, hid_dim, out_dim)

    # Case 1: all-f32 (f32 stored intermediates), tight tolerance.
    x1 = jax.random.normal(kx, (2, 4, in_dim), jnp.float32)
    y1 = jax.block_until_ready(mlp_pallas(x1, params, act_dtype=jnp.float32))
    np.testing.assert_allclose(np.asarray(y1), np.asarray(mlp_reference(x1, params)),
                               rtol=1e-3, atol=1e-3)
    assert y1.shape == (2, 4, out_dim)

    # Case 2: default bf16 intermediates, ragged batch (N=15) -> padding + row masking.
    x2 = jax.random.normal(jax.random.fold_in(kx, 1), (3, 5, in_dim), jnp.float32)
    y2 = jax.block_until_ready(mlp_pallas(x2, params))
    np.testing.assert_allclose(np.asarray(y2), np.asarray(mlp_reference(x2, params)),
                               rtol=6e-2, atol=6e-2)
    assert y2.shape == (3, 5, out_dim)

    # Case 3: full bf16 compute (weights + activations), loose tolerance.
    y3 = jax.block_until_ready(mlp_pallas(x1, params, compute_dtype=jnp.bfloat16))
    y3 = np.asarray(y3).astype(np.float32)
    assert np.all(np.isfinite(y3))
    np.testing.assert_allclose(y3, np.asarray(mlp_reference(x1, params)),
                               rtol=1.5e-1, atol=2e-1)

    # --- wide-input configuration: exercises the stored-h1 path + 2-tile batch split ---
    in2, hd2, od2 = 300, 40, 24
    params2 = init_params(kp2, in2, hd2, od2)
    x3 = jax.random.normal(jax.random.fold_in(kx, 2), (4, 9, in2), jnp.float32)

    # Case 4: stored-h1 path, all-f32, tight tolerance.
    y4 = jax.block_until_ready(mlp_pallas(x3, params2, act_dtype=jnp.float32))
    np.testing.assert_allclose(np.asarray(y4), np.asarray(mlp_reference(x3, params2)),
                               rtol=1e-3, atol=1e-3)
    assert y4.shape == (4, 9, od2)

    # Case 5: stored-h1 path with default bf16 intermediates.
    y5 = jax.block_until_ready(mlp_pallas(x3, params2))
    np.testing.assert_allclose(np.asarray(y5), np.asarray(mlp_reference(x3, params2)),
                               rtol=1e-1, atol=1e-1)

    print("KERNEL_OK")
</pallas_src>

<mosaic_0001>
module attributes {stable_mosaic.version = 11 : i64} {
  func.func @_linear_stats_only_kernel(%arg0: i32, %arg1: memref<8x128xf32, #tpu.memory_space<vmem>>, %arg2: memref<128x128xf32, #tpu.memory_space<vmem>>, %arg3: memref<1x2x128xf32, #tpu.memory_space<vmem>>) attributes {dimension_semantics = [#tpu.dimension_semantics<parallel>], iteration_bounds = array<i64: 1>, scalar_prefetch = 0 : i64, scratch_operands = 0 : i64, tpu.core_type = #tpu.core_type<tc>, window_params = [{transform_indices = @transform_0, window_bounds = array<i64: 8, 128>}, {pipeline_mode = #tpu.pipeline_mode<synchronous>, transform_indices = @transform_1, window_bounds = array<i64: 128, 128>}, {transform_indices = @transform_2, window_bounds = array<i64: 1, 2, 128>}]} {
    %c0 = arith.constant 0 : index
    %c0_0 = arith.constant 0 : index
    %0 = vector.load %arg1[%c0, %c0_0] : memref<8x128xf32, #tpu.memory_space<vmem>>, vector<8x128xf32>
    %c0_1 = arith.constant 0 : index
    %c0_2 = arith.constant 0 : index
    %1 = vector.load %arg2[%c0_1, %c0_2] : memref<128x128xf32, #tpu.memory_space<vmem>>, vector<128x128xf32>
    %cst = arith.constant dense<0.000000e+00> : vector<8x128xf32>
    %2 = tpu.matmul %0, %1, %cst {dimension_numbers = #tpu.dot_dimension_numbers<[1], [0], [0], [1], [0, 0, 1, 1], [], []>} : vector<8x128xf32>, vector<128x128xf32>, vector<8x128xf32> -> vector<8x128xf32>
    %cst_3 = arith.constant dense<0.000000e+00> : vector<128xf32>
    %3 = vector.multi_reduction <add>, %2, %cst_3 [0] : vector<8x128xf32> to vector<128xf32>
    %4 = vector.shape_cast %3 : vector<128xf32> to vector<1x128xf32>
    %5 = arith.mulf %2, %2 : vector<8x128xf32>
    %cst_4 = arith.constant dense<0.000000e+00> : vector<128xf32>
    %6 = vector.multi_reduction <add>, %5, %cst_4 [0] : vector<8x128xf32> to vector<128xf32>
    %7 = vector.shape_cast %6 : vector<128xf32> to vector<1x128xf32>
    %8 = tpu.concatenate %4, %7 in 0 : vector<1x128xf32>, vector<1x128xf32> -> vector<2x128xf32>
    %9 = vector.shape_cast %8 : vector<2x128xf32> to vector<1x2x128xf32>
    %c0_5 = arith.constant 0 : index
    %c0_6 = arith.constant 0 : index
    %c0_7 = arith.constant 0 : index
    %10 = vector.load %arg3[%c0_5, %c0_6, %c0_7] : memref<1x2x128xf32, #tpu.memory_space<vmem>>, vector<1x2x128xf32>
    tpu.vector_store %arg3[%c0_5, %c0_6, %c0_7], %9 {strides = array<i32>} : memref<1x2x128xf32, #tpu.memory_space<vmem>>, vector<1x2x128xf32>,
    return
  }
  func.func @transform_0(%arg0: i32) -> (i32, i32) {
    %c0_i32 = arith.constant 0 : i32
    %c0_i32_0 = arith.constant 0 : i32
    return %arg0, %c0_i32 : i32, i32
  }
  func.func @transform_1(%arg0: i32) -> (i32, i32) {
    %c0_i32 = arith.constant 0 : i32
    %c0_i32_0 = arith.constant 0 : i32
    %c0_i32_1 = arith.constant 0 : i32
    return %c0_i32, %c0_i32_0 : i32, i32
  }
  func.func @transform_2(%arg0: i32) -> (i32, i32, i32) {
    %c0_i32 = arith.constant 0 : i32
    %c0_i32_0 = arith.constant 0 : i32
    %c0_i32_1 = arith.constant 0 : i32
    return %arg0, %c0_i32, %c0_i32_0 : i32, i32, i32
  }
}

</mosaic_0001>

<bundles_post_ra>
// kernel: tpu_custom_call.1
= control target key start
LH: loop header
LB: loop body
LE: loop exit
PB: predicated region body
PF: predicated region fallthrough
CT: control target
= control target key end

     0   :  { %7 = vsyncpa [#allocation3], 0  ;;  %s379_s0 = inlined_call_operand.hbm [shape: f32[8,128], index: 0, kind: input, shape index: {}]   ;;  %s380_s1 = inlined_call_operand.hbm [shape: f32[128,128], index: 1, kind: input, shape index: {}]   ;;  %s381_s2 = inlined_call_operand.hbm [shape: f32[1,2,128], index: 2, kind: output, shape index: {}]  }
   0x1   :  { %8 = vsyncpa [#allocation6], 0 }
   0x2   :  { %9 = vsyncpa [#allocation4], 0  ;;  %s313_s9 = smov [#allocation2]   ;;  %s314_s11 = smov [#allocation5]  }
   0x3   :  { %s16_s10 = sshll.u32 %s313_s9, 4  ;;  %s25_s12 = sshll.u32 %s314_s11, 4  ;;  %s17_s10 = int_to_ptr.vmem [resolvable:$true] %s16_s10  ;;  %s336_s12 = int_to_ptr.vmem [resolvable:$true] %s25_s12 }
   0x4   :  { %s241_s15 = scalar_lea.hbm %s379_s0, 128 }
   0x5   :  { %p242_p0 = scmp.ne.s32.totalorder %s379_s0, %s241_s15  ;;  %p245_p1 = scmp.lt.u32.totalorder %s241_s15, %s379_s0 }
   0x7   :  { %p247_p2 = pnand %p245_p1, %p242_p0 }
   0x9   :  { %250 = shalt.err (!%p247_p2)
}
   0xa   :  { %s251_s20 = scalar_lea.vmem %s17_s10, 128  ;;  %p256_p4 = scmp.lt.s32.totalorder %s17_s10, %s17_s10 }
   0xb   :  { %p252_p3 = scmp.ne.s32.totalorder %s17_s10, %s251_s20  ;;  %p257_p5 = scmp.lt.s32.totalorder %s251_s20, %s251_s20 }
   0xd   :  { %p258_p6 = por %p257_p5, %p256_p4 }
   0xf   :  { %p259_p7 = pnand %p258_p6, %p252_p3 }
  0x11   :  { %262 = shalt.err (!%p259_p7)
}
  0x12   :  { %19 = dma.hbm_to_vmem [thread:$0]  %s379_s0, 128, %s17_s10, [#allocation3]  }
  0x13   :  { %s263_s25 = scalar_lea.hbm %s380_s1, 2048 }
  0x14   :  { %p264_p8 = scmp.ne.s32.totalorder %s380_s1, %s263_s25  ;;  %p267_p9 = scmp.lt.u32.totalorder %s263_s25, %s380_s1 }
  0x16   :  { %p269_p10 = pnand %p267_p9, %p264_p8 }
  0x18   :  { %272 = shalt.err (!%p269_p10)
}
  0x19   :  { %s273_s30 = scalar_lea.vmem %s336_s12, 2048  ;;  %p278_p12 = scmp.lt.s32.totalorder %s336_s12, %s336_s12 }
  0x1a   :  { %p274_p11 = scmp.ne.s32.totalorder %s336_s12, %s273_s30  ;;  %p279_p13 = scmp.lt.s32.totalorder %s273_s30, %s273_s30 }
  0x1c   :  { %p280_p0 = por %p279_p13, %p278_p12 }
  0x1e   :  { %p281_p1 = pnand %p280_p0, %p274_p11 }
  0x20   :  { %284 = shalt.err (!%p281_p1)
}
  0x21   :  { %s315_s0 = smov 128   ;;  %s316_s3 = smov 8  }
  0x22   :  { %31 = dma.hbm_to_vmem [thread:$0]  %s380_s1, 2048, %s336_s12, [#allocation6], %s315_s0, %s315_s0, %s316_s3  }
  0x23   :  { %307 = dma.done.wait [#allocation3], 128  }
  0x24   :  { %308 = vsyncadd [#allocation3], 4294967168 }
  0x25   :  { %309 = dma.done.wait [#allocation6], 2048  }
  0x26   :  { %310 = vsyncadd [#allocation6], 4294965248  ;;  %v317_v0 = vmov 0.0|0.0   ;;  %vm318_vm0 = vmmov 0   ;;  %v319_v1 = vmov 0.0   ;;  %v39_v2 = vld [vmem:[#allocation5] sm:$0xff] }
  0x27   :  { %209 = vmatprep.subr.bf16.mxu0 %v317_v0  ;;  %206 = vmatprep.mubr.msk.f32.mxu0 %vm318_vm0, %v319_v1  ;;  %v40_v3 = vld [vmem:[#allocation5 + $0x8] sm:$0xff]  ;;  %v41_v4 = vld [vmem:[#allocation5 + $0x10] sm:$0xff]  ;;  %v42_v6 = vld [vmem:[#allocation5 + $0x18] sm:$0xff]  ;;  %s320_s1 = smov [#allocation7]   ;;  %vm138_vm1 = vcmask 1040384  }
  0x28   :  { %v210_v5 = vpack.c.bf16 %v40_v3, %v39_v2  ;;  %v213_v7 = vpack.c.bf16 %v42_v6, %v41_v4  ;;  %v43_v8 = vld [vmem:[#allocation5 + $0x20] sm:$0xff]  ;;  %v44_v9 = vld [vmem:[#allocation5 + $0x28] sm:$0xff]  ;;  %v45_v11 = vld [vmem:[#allocation5 + $0x30] sm:$0xff]  ;;  %s147_s6 = sshll.u32 %s320_s1, 4  ;;  %s148_s6 = int_to_ptr.vmem [resolvable:$true] %s147_s6 }
  0x29   :  { %v216_v10 = vpack.c.bf16 %v44_v9, %v43_v8  ;;  %v46_v12 = vld [vmem:[#allocation5 + $0x38] sm:$0xff]  ;;  %v47_v14 = vld [vmem:[#allocation5 + $0x40] sm:$0xff]  ;;  %v48_v15 = vld [vmem:[#allocation5 + $0x48] sm:$0xff]  ;;  %s285_s7 = scalar_lea.vmem %s148_s6, 32  ;;  %p290_p3 = scmp.lt.s32.totalorder %s148_s6, %s148_s6 }
  0x2a   :  { %211 = vmatpush3.bf16.msra.mxu0 %v210_v5  ;;  %v219_v13 = vpack.c.bf16 %v46_v12, %v45_v11  ;;  %v222_v16 = vpack.c.bf16 %v48_v15, %v47_v14  ;;  %v49_v17 = vld [vmem:[#allocation5 + $0x50] sm:$0xff]  ;;  %v50_v18 = vld [vmem:[#allocation5 + $0x58] sm:$0xff]  ;;  %v51_v20 = vld [vmem:[#allocation5 + $0x60] sm:$0xff]  ;;  %p286_p2 = scmp.ne.s32.totalorder %s148_s6, %s285_s7  ;;  %p291_p4 = scmp.lt.s32.totalorder %s285_s7, %s285_s7 }
  0x2b   :  { %212 = vmatprep.subr.bf16.mxu0 %v317_v0  ;;  %v225_v19 = vpack.c.bf16 %v50_v18, %v49_v17  ;;  %v52_v21 = vld [vmem:[#allocation5 + $0x68] sm:$0xff]  ;;  %v53_v23 = vld [vmem:[#allocation5 + $0x70] sm:$0xff]  ;;  %v54_v24 = vld [vmem:[#allocation5 + $0x78] sm:$0xff] }
  0x2c   :  { %v228_v22 = vpack.c.bf16 %v52_v21, %v51_v20  ;;  %v231_v25 = vpack.c.bf16 %v54_v24, %v53_v23  ;;  %v38_v26 = vld [vmem:[#allocation2] sm:$0xff]  ;;  %p292_p5 = por %p291_p4, %p290_p3 }
  0x2e   :  { %214 = vmatpush3.bf16.msra.mxu0 %v213_v7  ;;  %p293_p6 = pnand %p292_p5, %p286_p2 }
  0x2f   :  { %215 = vmatprep.subr.bf16.mxu0 %v317_v0 }
  0x32   :  { %217 = vmatpush3.bf16.msra.mxu0 %v216_v10 }
  0x33   :  { %218 = vmatprep.subr.bf16.mxu0 %v317_v0 }
  0x36   :  { %220 = vmatpush3.bf16.msra.mxu0 %v219_v13 }
  0x37   :  { %221 = vmatprep.subr.bf16.mxu0 %v317_v0 }
  0x3a   :  { %223 = vmatpush3.bf16.msra.mxu0 %v222_v16 }
  0x3b   :  { %224 = vmatprep.subr.bf16.mxu0 %v317_v0 }
  0x3e   :  { %226 = vmatpush3.bf16.msra.mxu0 %v225_v19 }
  0x3f   :  { %227 = vmatprep.subr.bf16.mxu0 %v317_v0 }
  0x42   :  { %229 = vmatpush3.bf16.msra.mxu0 %v228_v22 }
  0x43   :  { %230 = vmatprep.subr.bf16.mxu0 %v317_v0 }
  0x46   :  { %232 = vmatpush3.bf16.msra.mxu0 %v231_v25 }
  0x49   :  { %207 = vmatmul.mubr.f32.vlgmr.msra.gmra.mrb[0].mxu0 %v38_v26 }
 0x11c   :  { %v121_v27 = vpop.f32.mrb[0].mxu0 }
 0x11d   :  { %v125_v28 = vrot.slane %v121_v27, 4  ;;  %v131_v29 = vmul.f32 %v121_v27, %v121_v27  ;;  %v208_v30 = vpop.f32.mrb[1].mxu0 }
 0x11f   :  { %v126_v31 = vadd.f32 %v125_v28, %v121_v27  ;;  %v132_v32 = vrot.slane %v131_v29, 4 }
 0x121   :  { %v127_v33 = vrot.slane %v126_v31, 2  ;;  %v133_v34 = vadd.f32 %v132_v32, %v131_v29 }
 0x123   :  { %v128_v35 = vadd.f32 %v127_v33, %v126_v31  ;;  %v134_v36 = vrot.slane %v133_v34, 2 }
 0x125   :  { %v129_v37 = vrot.slane %v128_v35, 1  ;;  %v135_v38 = vadd.f32 %v134_v36, %v133_v34 }
 0x127   :  { %v136_v39 = vrot.slane %v135_v38, 1  ;;  %v130_v40 = vadd.f32 %v129_v37, %v128_v35 }
 0x129   :  { %v137_v41 = vadd.f32 %v136_v39, %v135_v38 }
 0x12b   :  { %v139_v42 = vsel %vm138_vm1, %v130_v40, %v137_v41 }
 0x12c   :  { %140 = vst [vmem:[#allocation7] sm:$0x3] %v139_v42 }
 0x12d   :  { %296 = shalt.err (!%p293_p6)
}
 0x12e   :  { %s297_s10 = scalar_lea.hbm %s381_s2, 32 }
 0x12f   :  { %p298_p7 = scmp.ne.s32.totalorder %s381_s2, %s297_s10  ;;  %p301_p8 = scmp.lt.u32.totalorder %s297_s10, %s381_s2 }
 0x131   :  { %p303_p9 = pnand %p301_p8, %p298_p7 }
 0x133   :  { %306 = shalt.err (!%p303_p9)
}
 0x134   :  { %150 = dma.vmem_to_hbm [thread:$0]  %s148_s6, 32, %s381_s2, [#allocation4]  }
 0x135   :  { %311 = dma.done.wait [#allocation4], 32  }
 0x136   :  { %312 = vsyncadd [#allocation4], 4294967264 }
 0x137   :  { %154 = vsyncpa [#allocation3], 1 }
 0x138   :  { %155 = vsyncpa [#allocation6], 1 }
 0x139   :  { %156 = vsyncpa [#allocation4], 1 }

</bundles_post_ra>
